<compile_context>
chip_gen: v5e
topology: v5e:2x2
jax: 0.10.0
libtpu: 0.0.40
codegen_flags: <defaults>
</compile_context>

<pallas_src>
import functools

import jax
import jax.numpy as jnp
from jax.experimental import pallas as pl
from jax.experimental.pallas import tpu as pltpu

_LANE = 128
_SQRT2 = 1.4142135623730951
_GELU_TANH_C = 0.7978845608028654      # sqrt(2/pi)
_BLOCK_BYTES = 2 << 20                 # ~2 MiB of input per grid step
_ACC_ROWS = 32                         # folded accumulator height (sublane groups)
_VMEM_LIMIT = 32 * 1024 * 1024         # explicit scoped-VMEM limit (safe on v5e/v6e/v7x)


def _round_up(a, b):
    return ((a + b - 1) // b) * b


def _cdiv(a, b):
    return (a + b - 1) // b


def _min_sublane(itemsize):
    # Minimum second-to-last tile dim: (8,128) f32, (16,128) bf16, (32,128) int8.
    return {4: 8, 2: 16, 1: 32}.get(itemsize, 32)


def _plan(n, itemsize):
    """Pick (cols, tile_rows, n_pad) for a flat tensor of n elements."""
    cols = None
    for c in (1024, 512, 256, 128):      # widest lane-dense width dividing n
        if n % c == 0:
            cols = c
            n_pad = n
            break
    if cols is None:
        # TODO(synk): mask the tail lanes in-kernel to avoid this extra HBM
        # pad pass for element counts that are not a multiple of 128.
        cols = 512 if n >= 512 else _LANE
        n_pad = _round_up(n, cols)

    rows = n_pad // cols
    target_rows = max(_min_sublane(itemsize), (_BLOCK_BYTES // itemsize) // cols)
    if rows <= target_rows:
        tile_rows = rows                 # single block == full array dims (always legal)
    else:
        # Multiple of 32 rows => layout-legal for f32 / bf16 / int8 alike, and
        # compatible with the sublane-group fold in the reduce kernel.
        tile_rows = _round_up(min(target_rows, rows), 32)
    return cols, tile_rows, n_pad


def _phish_math(x, approximate):
    """x * tanh(gelu(x)); exact (erf) GELU by default to match torch."""
    xf = x.astype(jnp.float32)
    if approximate:
        gelu = 0.5 * xf * (1.0 + jnp.tanh(_GELU_TANH_C * (xf + 0.044715 * xf * xf * xf)))
    else:
        gelu = 0.5 * xf * (1.0 + jax.lax.erf(xf * (1.0 / _SQRT2)))
    return xf * jnp.tanh(gelu)


def _phish_elemwise_kernel(x_ref, o_ref, *, approximate):
    o_ref[...] = _phish_math(x_ref[...], approximate).astype(o_ref.dtype)


def _phish_reduce_kernel(x_ref, o_ref, acc_ref, *, approximate, tile_rows,
                         cols, acc_rows, num_blocks, total_rows, ragged_rows):
    c = pl.program_id(0)
    j = pl.program_id(1)
    steps = pl.num_programs(1)
    block_idx = c * steps + j

    @pl.when(j == 0)
    def _():
        acc_ref[...] = jnp.zeros_like(acc_ref)

    # Skip phantom blocks (the clamped re-read when num_blocks is odd and the
    # work is split across two partials).
    @pl.when(block_idx < num_blocks)
    def _():
        x = x_ref[...]
        if ragged_rows:
            # Zero the rows of the (possibly) partial last block; phish(0) == 0
            # so zeroed rows contribute nothing to the sum.
            row = jax.lax.broadcasted_iota(jnp.int32, (tile_rows, cols), 0)
            in_bounds = (block_idx * tile_rows + row) < total_rows
            x = jnp.where(in_bounds, x, jnp.zeros_like(x))
        y = _phish_math(x, approximate)
        if acc_rows == tile_rows:
            acc_ref[...] += y
        else:
            # Fold sublane groups with plain vreg-aligned VPU adds (no XLU),
            # then add the small folded tile into the accumulator.
            acc_ref[...] += y.reshape(tile_rows // acc_rows, acc_rows, cols).sum(axis=0)

    @pl.when(j == steps - 1)
    def _():
        # Single XLU cross-lane reduce per partial, broadcast into a
        # layout-legal (1, 8, 128) output block.
        o_ref[...] = jnp.full(o_ref.shape, jnp.sum(acc_ref[...]), jnp.float32)


@functools.partial(jax.jit, static_argnames=("reduction", "approximate"))
def phish(x, reduction="mean", approximate=False):
    """Pallas implementation of Phish with optional reduction."""
    if reduction not in ("none", "mean", "sum"):
        raise ValueError(f"invalid reduction: {reduction}")

    n = x.size
    itemsize = jnp.dtype(x.dtype).itemsize
    cols, tile_rows, n_pad = _plan(n, itemsize)

    flat = x.reshape(-1)
    if n_pad != n:
        # Ragged fallback only (n % 128 != 0); phish(0) == 0 keeps it inert.
        flat = jnp.pad(flat, (0, n_pad - n))
    x2 = flat.reshape(-1, cols)          # free: contiguous reshape, no copy
    rows = x2.shape[0]
    num_blocks = _cdiv(rows, tile_rows)
    ragged_rows = (rows % tile_rows) != 0

    flops = 10 * n
    transcendentals = 2 * n              # erf (or tanh) + tanh per element

    if reduction == "none":
        out = pl.pallas_call(
            functools.partial(_phish_elemwise_kernel, approximate=approximate),
            out_shape=jax.ShapeDtypeStruct((rows, cols), x.dtype),
            grid=(num_blocks,),
            in_specs=[pl.BlockSpec((tile_rows, cols), lambda i: (i, 0))],
            out_specs=pl.BlockSpec((tile_rows, cols), lambda i: (i, 0)),
            compiler_params=pltpu.CompilerParams(
                dimension_semantics=("parallel",),
                vmem_limit_bytes=_VMEM_LIMIT),
            cost_estimate=pl.CostEstimate(
                flops=flops, transcendentals=transcendentals,
                bytes_accessed=2 * n * itemsize),
        )(x2)
        if n_pad != n:
            return out.reshape(-1)[:n].reshape(x.shape)
        return out.reshape(x.shape)

    # 'mean' / 'sum': two per-core partial sums (v7x megacore) whenever there
    # is more than one block; partials are combined in the wrapper.
    n_partials = 2 if num_blocks >= 2 else 1
    steps = _cdiv(num_blocks, n_partials)
    acc_rows = _ACC_ROWS if tile_rows % _ACC_ROWS == 0 else tile_rows

    kernel = functools.partial(
        _phish_reduce_kernel, approximate=approximate, tile_rows=tile_rows,
        cols=cols, acc_rows=acc_rows, num_blocks=num_blocks, total_rows=rows,
        ragged_rows=ragged_rows)

    out = pl.pallas_call(
        kernel,
        out_shape=jax.ShapeDtypeStruct((n_partials, 8, _LANE), jnp.float32),
        grid=(n_partials, steps),
        in_specs=[pl.BlockSpec(
            (tile_rows, cols),
            lambda c, j: (jnp.minimum(c * steps + j, num_blocks - 1), 0))],
        out_specs=pl.BlockSpec((1, 8, _LANE), lambda c, j: (c, 0, 0)),
        scratch_shapes=[pltpu.VMEM((acc_rows, cols), jnp.float32)],
        compiler_params=pltpu.CompilerParams(
            dimension_semantics=("parallel", "arbitrary"),
            vmem_limit_bytes=_VMEM_LIMIT),
        cost_estimate=pl.CostEstimate(
            flops=flops, transcendentals=transcendentals,
            bytes_accessed=n * itemsize + n_partials * 8 * _LANE * 4),
    )(x2)

    total = jnp.sum(out[:, 0, 0])
    if reduction == "mean":
        return (total / jnp.float32(n)).astype(x.dtype)
    return total.astype(x.dtype)


def _phish_ref(x, reduction="mean"):
    """Pure-JAX reference (exact erf GELU, matching torch) for checking."""
    y = _phish_math(x, approximate=False).astype(x.dtype)
    if reduction == "mean":
        return jnp.mean(y)
    if reduction == "sum":
        return jnp.sum(y)
    return y


if __name__ == "__main__":
    key = jax.random.PRNGKey(0)

    # Small NCHW-like input, consistent with a conv-activation use case.
    x = jax.random.normal(key, (2, 4, 16, 16), dtype=jnp.float32)

    out_mean = jax.block_until_ready(phish(x, reduction="mean"))
    out_sum = jax.block_until_ready(phish(x, reduction="sum"))
    out_none = jax.block_until_ready(phish(x, reduction="none"))

    assert out_none.shape == x.shape and out_none.dtype == x.dtype
    assert jnp.allclose(out_mean, _phish_ref(x, "mean"), rtol=1e-5, atol=1e-5)
    assert jnp.allclose(out_sum, _phish_ref(x, "sum"), rtol=1e-4, atol=1e-4)
    assert jnp.allclose(out_none, _phish_ref(x, "none"), rtol=1e-5, atol=1e-5)

    # Larger input exercising: multi-block grid, odd block count (clamped
    # phantom block on the second partial), and a partial (ragged) last
    # row-block — all with zero pad/unpad copies (1126400 = 1100 * 1024).
    x_big = jax.random.normal(jax.random.PRNGKey(1), (4, 11, 160, 160),
                              dtype=jnp.float32)
    big_mean = jax.block_until_ready(phish(x_big, reduction="mean"))
    big_sum = jax.block_until_ready(phish(x_big, reduction="sum"))
    big_none = jax.block_until_ready(phish(x_big, reduction="none"))

    assert big_none.shape == x_big.shape and big_none.dtype == x_big.dtype
    assert jnp.allclose(big_mean, _phish_ref(x_big, "mean"), rtol=1e-3, atol=1e-5)
    assert jnp.allclose(big_sum, _phish_ref(x_big, "sum"), rtol=1e-3, atol=1e-2)
    assert jnp.allclose(big_none, _phish_ref(x_big, "none"), rtol=1e-5, atol=1e-5)

    # Ragged size (n % 128 != 0) exercising the pad fallback path.
    x_rag = jax.random.normal(jax.random.PRNGKey(2), (3, 3, 7, 5),
                              dtype=jnp.float32)
    rag_none = jax.block_until_ready(phish(x_rag, reduction="none"))
    rag_mean = jax.block_until_ready(phish(x_rag, reduction="mean"))
    rag_sum = jax.block_until_ready(phish(x_rag, reduction="sum"))

    assert rag_none.shape == x_rag.shape and rag_none.dtype == x_rag.dtype
    assert jnp.allclose(rag_none, _phish_ref(x_rag, "none"), rtol=1e-5, atol=1e-5)
    assert jnp.allclose(rag_mean, _phish_ref(x_rag, "mean"), rtol=1e-4, atol=1e-5)
    assert jnp.allclose(rag_sum, _phish_ref(x_rag, "sum"), rtol=1e-4, atol=1e-4)

    print("KERNEL_OK")
</pallas_src>

<mosaic_0001>
module attributes {stable_mosaic.version = 11 : i64} {
  func.func @_phish_reduce_kernel(%arg0: i32, %arg1: i32, %arg2: memref<2x1024xf32, #tpu.memory_space<vmem>>, %arg3: memref<1x8x128xf32, #tpu.memory_space<vmem>>, %arg4: memref<2x1024xf32, #tpu.memory_space<vmem>>) attributes {dimension_semantics = [#tpu.dimension_semantics<parallel>, #tpu.dimension_semantics<arbitrary>], iteration_bounds = array<i64: 1, 1>, scalar_prefetch = 0 : i64, scratch_operands = 1 : i64, tpu.core_type = #tpu.core_type<tc>, window_params = [{transform_indices = @transform_0, window_bounds = array<i64: 2, 1024>}, {transform_indices = @transform_1, window_bounds = array<i64: 1, 8, 128>}]} {
    %c1_i32 = arith.constant 1 : i32
    %0 = arith.muli %arg0, %c1_i32 : i32
    %1 = arith.addi %0, %arg1 : i32
    %c0_i32 = arith.constant 0 : i32
    %2 = arith.cmpi eq, %arg1, %c0_i32 : i32
    %3 = arith.extui %2 : i1 to i32
    %c0_i32_0 = arith.constant 0 : i32
    %4 = arith.cmpi ne, %3, %c0_i32_0 : i32
    scf.if %4 {
      %cst = arith.constant 0.000000e+00 : f32
      %11 = vector.broadcast %cst : f32 to vector<2x1024xf32>
      %c0 = arith.constant 0 : index
      %c0_5 = arith.constant 0 : index
      %12 = vector.load %arg4[%c0, %c0_5] : memref<2x1024xf32, #tpu.memory_space<vmem>>, vector<2x1024xf32>
      tpu.vector_store %arg4[%c0, %c0_5], %11 {strides = array<i32>} : memref<2x1024xf32, #tpu.memory_space<vmem>>, vector<2x1024xf32>,
    } else {
    }
    %c1_i32_1 = arith.constant 1 : i32
    %5 = arith.cmpi slt, %1, %c1_i32_1 : i32
    %6 = arith.extui %5 : i1 to i32
    %c0_i32_2 = arith.constant 0 : i32
    %7 = arith.cmpi ne, %6, %c0_i32_2 : i32
    scf.if %7 {
      %c0 = arith.constant 0 : index
      %c0_5 = arith.constant 0 : index
      %11 = vector.load %arg2[%c0, %c0_5] : memref<2x1024xf32, #tpu.memory_space<vmem>>, vector<2x1024xf32>
      %cst = arith.constant 5.000000e-01 : f32
      %12 = vector.broadcast %cst : f32 to vector<2x1024xf32>
      %13 = arith.mulf %12, %11 : vector<2x1024xf32>
      %cst_6 = arith.constant 0.707106769 : f32
      %14 = vector.broadcast %cst_6 : f32 to vector<2x1024xf32>
      %15 = arith.mulf %11, %14 : vector<2x1024xf32>
      %16 = math.erf %15 : vector<2x1024xf32>
      %cst_7 = arith.constant 1.000000e+00 : f32
      %17 = vector.broadcast %cst_7 : f32 to vector<2x1024xf32>
      %18 = arith.addf %17, %16 : vector<2x1024xf32>
      %19 = arith.mulf %13, %18 : vector<2x1024xf32>
      %20 = math.tanh %19 : vector<2x1024xf32>
      %21 = arith.mulf %11, %20 : vector<2x1024xf32>
      %c0_8 = arith.constant 0 : index
      %c0_9 = arith.constant 0 : index
      %22 = vector.load %arg4[%c0_8, %c0_9] : memref<2x1024xf32, #tpu.memory_space<vmem>>, vector<2x1024xf32>
      %23 = arith.addf %22, %21 : vector<2x1024xf32>
      %c0_10 = arith.constant 0 : index
      %c0_11 = arith.constant 0 : index
      %24 = vector.load %arg4[%c0_10, %c0_11] : memref<2x1024xf32, #tpu.memory_space<vmem>>, vector<2x1024xf32>
      tpu.vector_store %arg4[%c0_10, %c0_11], %23 {strides = array<i32>} : memref<2x1024xf32, #tpu.memory_space<vmem>>, vector<2x1024xf32>,
    } else {
    }
    %c0_i32_3 = arith.constant 0 : i32
    %8 = arith.cmpi eq, %arg1, %c0_i32_3 : i32
    %9 = arith.extui %8 : i1 to i32
    %c0_i32_4 = arith.constant 0 : i32
    %10 = arith.cmpi ne, %9, %c0_i32_4 : i32
    scf.if %10 {
      %c0 = arith.constant 0 : index
      %c0_5 = arith.constant 0 : index
      %11 = vector.load %arg4[%c0, %c0_5] : memref<2x1024xf32, #tpu.memory_space<vmem>>, vector<2x1024xf32>
      %12 = vector.shape_cast %11 : vector<2x1024xf32> to vector<1x2x1024xf32>
      %cst = arith.constant dense<0.000000e+00> : vector<1xf32>
      %13 = vector.multi_reduction <add>, %12, %cst [1, 2] : vector<1x2x1024xf32> to vector<1xf32>
      %14 = vector.shape_cast %13 : vector<1xf32> to vector<1x1x1xf32>
      %15 = vector.extract %14[0, 0, 0] : f32 from vector<1x1x1xf32>
      %16 = vector.broadcast %15 : f32 to vector<1x8x128xf32>
      %c0_6 = arith.constant 0 : index
      %c0_7 = arith.constant 0 : index
      %c0_8 = arith.constant 0 : index
      %17 = vector.load %arg3[%c0_6, %c0_7, %c0_8] : memref<1x8x128xf32, #tpu.memory_space<vmem>>, vector<1x8x128xf32>
      tpu.vector_store %arg3[%c0_6, %c0_7, %c0_8], %16 {strides = array<i32>} : memref<1x8x128xf32, #tpu.memory_space<vmem>>, vector<1x8x128xf32>,
    } else {
    }
    return
  }
  func.func @transform_0(%arg0: i32, %arg1: i32) -> (i32, i32) {
    %c1_i32 = arith.constant 1 : i32
    %0 = arith.muli %arg0, %c1_i32 : i32
    %1 = arith.addi %0, %arg1 : i32
    %c0_i32 = arith.constant 0 : i32
    %2 = arith.minsi %1, %c0_i32 : i32
    %c0_i32_0 = arith.constant 0 : i32
    %c0_i32_1 = arith.constant 0 : i32
    return %2, %c0_i32_0 : i32, i32
  }
  func.func @transform_1(%arg0: i32, %arg1: i32) -> (i32, i32, i32) {
    %c0_i32 = arith.constant 0 : i32
    %c0_i32_0 = arith.constant 0 : i32
    %c0_i32_1 = arith.constant 0 : i32
    return %arg0, %c0_i32, %c0_i32_0 : i32, i32, i32
  }
}

</mosaic_0001>

<bundles_post_ra>
// kernel: phish.1
= control target key start
LH: loop header
LB: loop body
LE: loop exit
PB: predicated region body
PF: predicated region fallthrough
CT: control target
= control target key end

     0   :  { %vm175_vm8 = vcmask 1041408   ;;  %s271_s0 = inlined_call_operand.vmem [shape: f32[2,1024], index: 0, kind: input, shape index: {}]   ;;  %s272_s1 = inlined_call_operand.vmem [shape: f32[1,8,128], index: 1, kind: output, shape index: {}]  }
   0x1   :  { %v237_v0 = vld [vmem:[%s271_s0] sm:$0xff]  ;;  %v242_v1 = vld [vmem:[%s271_s0 + $0x8] sm:$0xff] }
   0x2   :  { %v245_v2 = vmul.f32 0.70710677, %v237_v0  ;;  %v248_v3 = vmul.f32 0.70710677, %v242_v1 }
   0x4   :  { %v55_v4 = vmul.f32 %v245_v2, %v245_v2  ;;  %v95_v5 = vmul.f32 %v248_v3, %v248_v3 }
   0x6   :  { %v56_v6 = vmin.f32 %v55_v4, 16.0  ;;  %v96_v7 = vmin.f32 %v95_v5, 16.0 }
   0x8   :  { %v57_v8 = vmul.f32 2.1237322e-06, %v56_v6  ;;  %v68_v9 = vmul.f32 3.8918573e-05, %v56_v6  ;;  %v97_v10 = vmul.f32 2.1237322e-06, %v96_v7 }
   0x9   :  { %v108_v11 = vmul.f32 3.8918573e-05, %v96_v7 }
   0xa   :  { %v58_v12 = vadd.f32 0.00028619796, %v57_v8  ;;  %v69_v13 = vadd.f32 0.001143296, %v68_v9  ;;  %v98_v14 = vadd.f32 0.00028619796, %v97_v10 }
   0xb   :  { %v109_v15 = vadd.f32 0.001143296, %v108_v11 }
   0xc   :  { %v59_v16 = vmul.f32 %v58_v12, %v56_v6  ;;  %v70_v17 = vmul.f32 %v69_v13, %v56_v6  ;;  %v99_v18 = vmul.f32 %v98_v14, %v96_v7  ;;  %v51_v12 = vmul.f32 0.5, %v237_v0 }
   0xd   :  { %v110_v19 = vmul.f32 %v109_v15, %v96_v7  ;;  %v52_v14 = vmul.f32 0.5, %v242_v1 }
   0xe   :  { %v60_v20 = vadd.f32 0.0036580483, %v59_v16  ;;  %v71_v21 = vadd.f32 0.014752088, %v70_v17  ;;  %v100_v22 = vadd.f32 0.0036580483, %v99_v18 }
   0xf   :  { %v111_v23 = vadd.f32 0.014752088, %v110_v19 }
  0x10   :  { %v61_v24 = vmul.f32 %v60_v20, %v56_v6  ;;  %v72_v25 = vmul.f32 %v71_v21, %v56_v6  ;;  %v101_v26 = vmul.f32 %v100_v22, %v96_v7 }
  0x11   :  { %v112_v27 = vmul.f32 %v111_v23, %v96_v7 }
  0x12   :  { %v73_v28 = vadd.f32 0.112945676, %v72_v25  ;;  %v62_v29 = vadd.f32 0.05243302, %v61_v24  ;;  %v102_v32 = vadd.f32 0.05243302, %v101_v26 }
  0x13   :  { %v113_v30 = vadd.f32 0.112945676, %v112_v27 }
  0x14   :  { %v74_v31 = vmul.f32 %v73_v28, %v56_v6  ;;  %v63_v35 = vmul.f32 %v62_v29, %v56_v6  ;;  %v103_v38 = vmul.f32 %v102_v32, %v96_v7 }
  0x15   :  { %v114_v33 = vmul.f32 %v113_v30, %v96_v7 }
  0x16   :  { %v75_v34 = vadd.f32 0.4994258, %v74_v31  ;;  %v64_v41 = vadd.f32 0.18741608, %v63_v35  ;;  %v104_v43 = vadd.f32 0.18741608, %v103_v38 }
  0x17   :  { %v115_v36 = vadd.f32 0.4994258, %v114_v33 }
  0x18   :  { %v76_v37 = vmul.f32 %v75_v34, %v56_v6  ;;  %v65_v44 = vmul.f32 %v64_v41, %v56_v6  ;;  %v105_v45 = vmul.f32 %v104_v43, %v96_v7 }
  0x19   :  { %v116_v39 = vmul.f32 %v115_v36, %v96_v7 }
  0x1a   :  { %v77_v40 = vadd.f32 1.0, %v76_v37  ;;  %v66_v48 = vadd.f32 1.1283791, %v65_v44  ;;  %v106_v51 = vadd.f32 1.1283791, %v105_v45 }
  0x1b   :  { %v117_v42 = vadd.f32 1.0, %v116_v39 }
  0x1c   :  { %216 = vrcp.f32 %v77_v40  ;;  %vm83_vm0 = vweird.f32 %v77_v40  ;;  %v89_v50 = vand.u32 2147483648, %v77_v40  ;;  %v87_v54 = vand.u32 2147483647, %v77_v40 }
  0x1d   :  { %218 = vrcp.f32 %v117_v42  ;;  %v129_v55 = vand.u32 2147483648, %v117_v42  ;;  %vm123_vm2 = vweird.f32 %v117_v42  ;;  %v127_v57 = vand.u32 2147483647, %v117_v42 }
  0x1e   :  { %v90_v59 = vor.u32 1.1754944e-38, %v89_v50  ;;  %v67_v61 = vmul.f32 %v66_v48, %v245_v2  ;;  %vm88_vm5 = vcmp.eq.f32.partialorder %v87_v54, 8.507059e+37  ;;  %v107_v4 = vmul.f32 %v106_v51, %v248_v3 }
  0x1f   :  { %v130_v63 = vor.u32 1.1754944e-38, %v129_v55  ;;  %vm128_vm7 = vcmp.eq.f32.partialorder %v127_v57, 8.507059e+37 }
  0x22   :  { %v217_v46 = vpop.eup %216 }
  0x23   :  { %v219_v47 = vpop.eup %218  ;;  %v79_v49 = vmul.f32 %v217_v46, %v77_v40  ;;  %vm84_vm1 = vweird.f32 %v217_v46 }
  0x24   :  { %v119_v52 = vmul.f32 %v219_v47, %v117_v42  ;;  %vm124_vm3 = vweird.f32 %v219_v47  ;;  %vm85_vm4 = vmor %vm83_vm0, %vm84_vm1 }
  0x25   :  { %v80_v53 = vsub.f32 1.0, %v79_v49  ;;  %vm125_vm6 = vmor %vm123_vm2, %vm124_vm3 }
  0x26   :  { %v120_v56 = vsub.f32 1.0, %v119_v52 }
  0x27   :  { %v81_v58 = vmul.f32 %v217_v46, %v80_v53 }
  0x28   :  { %v121_v60 = vmul.f32 %v219_v47, %v120_v56 }
  0x29   :  { %v82_v62 = vadd.f32 %v217_v46, %v81_v58 }
  0x2a   :  { %v122_v5 = vadd.f32 %v219_v47, %v121_v60 }
  0x2b   :  { %v86_v6 = vsel %vm85_vm4, %v217_v46, %v82_v62 }
  0x2c   :  { %v91_v7 = vsel %vm88_vm5, %v90_v59, %v86_v6  ;;  %v126_v8 = vsel %vm125_vm6, %v219_v47, %v122_v5 }
  0x2d   :  { %v92_v9 = vmul.f32 %v91_v7, %v67_v61  ;;  %v131_v10 = vsel %vm128_vm7, %v130_v63, %v126_v8 }
  0x2e   :  { %v132_v11 = vmul.f32 %v131_v10, %v107_v4 }
  0x2f   :  { %v212_v13 = vclamps-f32 %v92_v9, 1.0 }
  0x30   :  { %v213_v2 = vclamps-f32 %v132_v11, 1.0 }
  0x31   :  { %v135_v15 = vadd.f32 1.0, %v212_v13 }
  0x32   :  { %v136_v16 = vadd.f32 1.0, %v213_v2 }
  0x33   :  { %v137_v17 = vmul.f32 %v135_v15, %v51_v12 }
  0x34   :  { %v138_v18 = vmul.f32 %v136_v16, %v52_v14 }
  0x35   :  { %220 = vtanh.f32 %v137_v17 }
  0x36   :  { %222 = vtanh.f32 %v138_v18 }
  0x3b   :  { %v221_v3 = vpop.eup %220 }
  0x3c   :  { %v223_v19 = vpop.eup %222  ;;  %v141_v20 = vmul.f32 %v221_v3, %v237_v0 }
  0x3d   :  { %v142_v21 = vmul.f32 %v223_v19, %v242_v1 }
  0x3e   :  { %156 = vst [vmem:[#allocation1] ss:$4 sm:$0xff] %v141_v20 }
  0x3f   :  { %158 = vst [vmem:[#allocation1 + $0x20] ss:$4 sm:$0xff] %v142_v21 }
  0x45   :  { %v159_v22 = vld.sshfl [vmem:[#allocation1] sm:$0xff pattern:$0x73625140]  ;;  %v160_v23 = vld.sshfl [vmem:[#allocation1 + $0x8] sm:$0xff pattern:$0x73625140] }
  0x46   :  { %v161_v24 = vld.sshfl [vmem:[#allocation1 + $0x10] sm:$0xff pattern:$0x73625140]  ;;  %v162_v25 = vld.sshfl [vmem:[#allocation1 + $0x18] sm:$0xff pattern:$0x73625140] }
  0x47   :  { %v176_v26 = vsel %vm175_vm8, %v159_v22, 0.0  ;;  %v177_v27 = vsel %vm175_vm8, %v160_v23, 0.0  ;;  %v179_v28 = vsel %vm175_vm8, %v161_v24, 0.0  ;;  %v163_v29 = vld.sshfl [vmem:[#allocation1 + $0x20] sm:$0xff pattern:$0x73625140] }
  0x48   :  { %v178_v30 = vadd.f32 %v177_v27, %v176_v26  ;;  %v181_v31 = vsel %vm175_vm8, %v162_v25, 0.0  ;;  %v164_v0 = vld.sshfl [vmem:[#allocation1 + $0x28] sm:$0xff pattern:$0x73625140]  ;;  %v183_v1 = vsel %vm175_vm8, %v163_v29, 0.0 }
  0x49   :  { %v165_v33 = vld.sshfl [vmem:[#allocation1 + $0x30] sm:$0xff pattern:$0x73625140]  ;;  %v185_v35 = vsel %vm175_vm8, %v164_v0, 0.0 }
  0x4a   :  { %v180_v32 = vadd.f32 %v179_v28, %v178_v30  ;;  %v166_v36 = vld.sshfl [vmem:[#allocation1 + $0x38] sm:$0xff pattern:$0x73625140]  ;;  %v187_v38 = vsel %vm175_vm8, %v165_v33, 0.0 }
  0x4b   :  { %v189_v40 = vsel %vm175_vm8, %v166_v36, 0.0 }
  0x4c   :  { %v182_v34 = vadd.f32 %v181_v31, %v180_v32 }
  0x4e   :  { %v184_v37 = vadd.f32 %v183_v1, %v182_v34 }
  0x50   :  { %v186_v39 = vadd.f32 %v185_v35, %v184_v37 }
  0x52   :  { %v188_v41 = vadd.f32 %v187_v38, %v186_v39 }
  0x54   :  { %v190_v42 = vadd.f32 %v189_v40, %v188_v41 }
  0x56   :  { %191 = vadd.xlane.f32.xlu0 %v190_v42 }
  0xc9   :  { %v192_v43 = vpop.xlane.xlu0 %191 }
  0xca   :  { %v193_v44 = vrot.slane %v192_v43, 4 }
  0xcc   :  { %v194_v45 = vadd.f32 %v193_v44, %v192_v43 }
  0xce   :  { %v195_v46 = vrot.slane %v194_v45, 2 }
  0xd0   :  { %v196_v47 = vadd.f32 %v195_v46, %v194_v45 }
  0xd2   :  { %v197_v48 = vrot.slane %v196_v47, 1 }
  0xd4   :  { %v198_v49 = vadd.f32 %v197_v48, %v196_v47 }
  0xd6   :  { %214 = vpush %v198_v49 }
 0x107   :  { %s215_s0 = spop %214 }
 0x108   :  { %v200_v50 = vstv %s215_s0 }
 0x109   :  { %201 = vst [vmem:[%s272_s1] sm:$0xff] %v200_v50 }

</bundles_post_ra>
